<compile_context>
chip_gen: v7x
topology: tpu7x:2x2x1
jax: 0.10.0
libtpu: 0.0.40
codegen_flags: <defaults>
</compile_context>

<pallas_src>
import jax
import jax.numpy as jnp
from jax import lax
from jax.experimental import pallas as pl
from jax.experimental.pallas import tpu as pltpu


# ----------------------------------------------------------------------------
# Kernels
# ----------------------------------------------------------------------------

def _linear_relu_kernel_small_c(x_ref, wt_ref, b_ref, o_ref):
    """C < 128 path: output tile is (C, P) per batch element -> P on lanes.

      x_ref : (tb, L, C)   batch tile of x, untouched [B, L, C] layout
      wt_ref: (L, P)       weight transposed once in the wrapper (parameter-sized)
      b_ref : (1, P)       f32 bias row (lane-dense)
      o_ref : (tb, C, P)   out[t, c, p] = relu(sum_l x[t,l,c] * w[p,l] + b[p])
    """
    tb, c, p = o_ref.shape
    wt = wt_ref[...]
    bias = jnp.broadcast_to(b_ref[...], (c, p))      # hoisted: once per grid step

    def body(i, carry):
        # Contract L (lhs dim 0 with rhs dim 0): (L, C) x (L, P) -> (C, P).
        y = lax.dot_general(
            x_ref[i], wt,
            dimension_numbers=(((0,), (0,)), ((), ())),
            preferred_element_type=jnp.float32)
        o_ref[i] = jnp.maximum(y + bias, 0.0).astype(o_ref.dtype)
        return carry

    # Small intermediates (few vregs) -> unroll tiny loops for LLO visibility.
    lax.fori_loop(0, tb, body, 0, unroll=True if tb <= 8 else None)


def _linear_relu_kernel_large_c(x_ref, w_ref, b_ref, o_ref):
    """C >= 128 path: C block (multiple of 128) is the lane axis, so the
    module layout [B, P, C] is written directly with dense stores.

      x_ref : (tb, L, cb)
      w_ref : (P, L)
      b_ref : (P, 1)   f32
      o_ref : (tb, P, cb)
    """
    tb, p, cb = o_ref.shape
    w = w_ref[...]
    bias = jnp.broadcast_to(b_ref[...], (p, cb))     # hoisted: once per grid step

    def body(i, carry):
        y = jnp.dot(w, x_ref[i], preferred_element_type=jnp.float32)   # (P, cb)
        o_ref[i] = jnp.maximum(y + bias, 0.0).astype(o_ref.dtype)
        return carry

    # Rolled loop: only one (P, cb) f32 intermediate live at a time.
    lax.fori_loop(0, tb, body, 0)


# ----------------------------------------------------------------------------
# Wrapper
# ----------------------------------------------------------------------------

def _round_up(v, m):
    return -(-v // m) * m


def _block_vmem_bytes(shape, dtype):
    """Approximate VMEM footprint of one buffer of this block (8x128 padding)."""
    item = jnp.dtype(dtype).itemsize
    sublane = max(8, 32 // item)          # f32 -> 8, bf16 -> 16, int8 -> 32
    lead = 1
    for d in shape[:-2]:
        lead *= d
    return lead * _round_up(shape[-2], sublane) * _round_up(shape[-1], 128) * item


def _pick_batch_tile(batch, per_elem_bytes, fixed_bytes, budget_bytes, max_tile):
    tb = max(1, min(int(max_tile), int(batch)))
    while tb > 1 and fixed_bytes + 2 * tb * per_elem_bytes > budget_bytes:
        tb -= 1
    return tb


def _vmem_budget_bytes():
    try:
        cap = int(pltpu.get_tpu_info().vmem_capacity_bytes)
    except Exception:
        cap = 64 * 1024 * 1024            # conservative (v7x-sized) fallback
    return cap, min(cap // 2, 64 * 1024 * 1024)


def linear_model_forward(x, weight, bias, *, output_layout="BPC",
                         max_batch_block=32):
    """
    x:      [B, seq_len, C]
    weight: [pred_len, seq_len]   (PyTorch nn.Linear convention)
    bias:   [pred_len]
    output_layout:
      "BPC" (default): [B, pred_len, C], exactly the PyTorch module output.
      "BCP":           [B, C, pred_len]  (the module's pre-permute layout);
                       for C < 128 this skips one XLA transpose pass.
    """
    B, L, C = x.shape
    P, L2 = weight.shape
    if L2 != L:
        raise ValueError("weight must have shape [pred_len, seq_len]")
    out_dtype = x.dtype

    # Cast only the (tiny, amortised) parameters to x's dtype.  Never cast x in
    # the wrapper -- that would add a full extra HBM pass on a bandwidth-bound
    # op.  Bias + epilogue stay f32 (v5e has no bf16 VPU/EUP).
    w = weight.astype(x.dtype)
    b_f32 = bias.astype(jnp.float32)

    vmem_cap, vmem_budget = _vmem_budget_bytes()

    cost = pl.CostEstimate(
        flops=2 * B * P * L * C,
        transcendentals=0,
        bytes_accessed=int(x.size * x.dtype.itemsize
                           + w.size * w.dtype.itemsize
                           + P * 4
                           + B * P * C * jnp.dtype(out_dtype).itemsize),
    )

    if C < 128:
        # ---- lane-dense (C, P) orientation; kernel emits [B, C, P] ----------
        w_t = w.T                          # (L, P): one-time parameter transpose
        b_row = b_f32.reshape(1, P)

        per_elem = (_block_vmem_bytes((1, L, C), x.dtype)
                    + _block_vmem_bytes((1, C, P), out_dtype))
        fixed = 2 * (_block_vmem_bytes((L, P), w.dtype)
                     + _block_vmem_bytes((1, P), jnp.float32))
        tb = _pick_batch_tile(B, per_elem, fixed, vmem_budget, max_batch_block)
        if B >= 2:                         # keep >= 2 grid steps so the parallel
            tb = min(tb, max(1, (B + 1) // 2))   # batch axis shards across 2 TCs
        grid = (pl.cdiv(B, tb),)
        vmem_limit = int(min(vmem_cap,
                             max(32 * 1024 * 1024,
                                 fixed + 2 * tb * per_elem + 8 * 1024 * 1024)))

        out_bcp = pl.pallas_call(
            _linear_relu_kernel_small_c,
            out_shape=jax.ShapeDtypeStruct((B, C, P), out_dtype),
            grid=grid,
            in_specs=[
                pl.BlockSpec((tb, L, C), lambda i: (i, 0, 0)),   # x batch tile
                pl.BlockSpec((L, P), lambda i: (0, 0)),          # resident weight
                pl.BlockSpec((1, P), lambda i: (0, 0)),          # resident bias
            ],
            out_specs=pl.BlockSpec((tb, C, P), lambda i: (i, 0, 0)),
            compiler_params=pltpu.CompilerParams(
                dimension_semantics=("parallel",),
                vmem_limit_bytes=vmem_limit),
            cost_estimate=cost,
        )(x, w_t, b_row)

        if output_layout == "BCP":
            return out_bcp
        # Module-exact layout: one XLA transpose of the small-C output.  Far
        # cheaper than the masked vst.msk stores a (.., P, C<128) tile forces.
        return jnp.transpose(out_bcp, (0, 2, 1))

    # ---- C >= 128: module layout [B, P, C] directly, C tiled lane-dense -----
    b_col = b_f32.reshape(P, 1)
    cb = 256 if (C % 256 == 0 or C >= 512) else 128
    per_elem = (_block_vmem_bytes((1, L, cb), x.dtype)
                + _block_vmem_bytes((1, P, cb), out_dtype))
    fixed = 2 * (_block_vmem_bytes((P, L), w.dtype)
                 + _block_vmem_bytes((P, 1), jnp.float32))
    tb = _pick_batch_tile(B, per_elem, fixed, vmem_budget, max_batch_block)
    gc = pl.cdiv(C, cb)
    if gc == 1 and B >= 2:
        tb = min(tb, max(1, (B + 1) // 2))
    grid = (pl.cdiv(B, tb), gc)
    vmem_limit = int(min(vmem_cap,
                         max(32 * 1024 * 1024,
                             fixed + 2 * tb * per_elem + 8 * 1024 * 1024)))

    out = pl.pallas_call(
        _linear_relu_kernel_large_c,
        out_shape=jax.ShapeDtypeStruct((B, P, C), out_dtype),
        grid=grid,
        in_specs=[
            pl.BlockSpec((tb, L, cb), lambda i, j: (i, 0, j)),   # x tile
            pl.BlockSpec((P, L), lambda i, j: (0, 0)),           # resident weight
            pl.BlockSpec((P, 1), lambda i, j: (0, 0)),           # resident bias
        ],
        out_specs=pl.BlockSpec((tb, P, cb), lambda i, j: (i, 0, j)),
        compiler_params=pltpu.CompilerParams(
            dimension_semantics=("parallel", "parallel"),
            vmem_limit_bytes=vmem_limit),
        cost_estimate=cost,
    )(x, w, b_col)

    if output_layout == "BCP":
        return jnp.transpose(out, (0, 2, 1))
    return out


# ----------------------------------------------------------------------------
# Self-test
# ----------------------------------------------------------------------------

def _reference(x, weight, bias):
    y = jnp.einsum("blc,pl->bpc", x, weight) + bias[None, :, None]
    return jnp.maximum(y, 0.0)


if __name__ == "__main__":
    key = jax.random.PRNGKey(0)
    k1, k2, k3, k4, k5 = jax.random.split(key, 5)

    # Small shapes consistent with the module: seq_len=8 -> pred_len=16.
    batch, seq_len, pred_len, channels = 2, 8, 16, 4
    bound = 1.0 / (seq_len ** 0.5)
    weight = jax.random.uniform(k1, (pred_len, seq_len), jnp.float32,
                                -bound, bound)
    bias = jax.random.uniform(k2, (pred_len,), jnp.float32, -bound, bound)
    x = jax.random.normal(k3, (batch, seq_len, channels), jnp.float32)

    # 1) Small-C path (C < 128): lane-dense kernel, module-layout return.
    out = linear_model_forward(x, weight, bias)
    jax.block_until_ready(out)
    ref = _reference(x, weight, bias)
    assert out.shape == (batch, pred_len, channels)
    assert jnp.allclose(out, ref, atol=1e-5, rtol=1e-5), "small-C path mismatch"

    # Same kernel, pre-permute [B, C, P] layout (skips the wrapper transpose).
    out_bcp = linear_model_forward(x, weight, bias, output_layout="BCP")
    jax.block_until_ready(out_bcp)
    assert jnp.allclose(jnp.transpose(out_bcp, (0, 2, 1)), ref,
                        atol=1e-5, rtol=1e-5), "BCP layout mismatch"

    # 2) Awkward batch size (B=3 does not divide the batch tile): boundary
    #    blocks are padded on read / clipped on write.
    x3 = jax.random.normal(k4, (3, seq_len, 5), jnp.float32)
    out3 = linear_model_forward(x3, weight, bias)
    jax.block_until_ready(out3)
    assert jnp.allclose(out3, _reference(x3, weight, bias),
                        atol=1e-5, rtol=1e-5), "awkward-batch mismatch"

    # 3) Large-C path (C >= 128): module layout written directly, C tiled
    #    in lane-dense multiples of 128.
    xc = jax.random.normal(k5, (batch, seq_len, 256), jnp.float32)
    outc = linear_model_forward(xc, weight, bias)
    jax.block_until_ready(outc)
    assert outc.shape == (batch, pred_len, 256)
    assert jnp.allclose(outc, _reference(xc, weight, bias),
                        atol=1e-5, rtol=1e-5), "large-C path mismatch"

    print("KERNEL_OK")
</pallas_src>

<mosaic_0001>
module attributes {stable_mosaic.version = 11 : i64} {
  func.func @_linear_relu_kernel_small_c(%arg0: i32, %arg1: memref<1x8x4xf32, #tpu.memory_space<vmem>>, %arg2: memref<8x16xf32, #tpu.memory_space<vmem>>, %arg3: memref<1x16xf32, #tpu.memory_space<vmem>>, %arg4: memref<1x4x16xf32, #tpu.memory_space<vmem>>) attributes {dimension_semantics = [#tpu.dimension_semantics<parallel>], iteration_bounds = array<i64: 2>, scalar_prefetch = 0 : i64, scratch_operands = 0 : i64, tpu.core_type = #tpu.core_type<tc>, window_params = [{transform_indices = @transform_0, window_bounds = array<i64: 1, 8, 4>}, {pipeline_mode = #tpu.pipeline_mode<synchronous>, transform_indices = @transform_1, window_bounds = array<i64: 8, 16>}, {pipeline_mode = #tpu.pipeline_mode<synchronous>, transform_indices = @transform_2, window_bounds = array<i64: 1, 16>}, {transform_indices = @transform_3, window_bounds = array<i64: 1, 4, 16>}]} {
    %c0 = arith.constant 0 : index
    %c0_0 = arith.constant 0 : index
    %0 = vector.load %arg2[%c0, %c0_0] : memref<8x16xf32, #tpu.memory_space<vmem>>, vector<8x16xf32>
    %c0_1 = arith.constant 0 : index
    %c0_2 = arith.constant 0 : index
    %1 = vector.load %arg3[%c0_1, %c0_2] : memref<1x16xf32, #tpu.memory_space<vmem>>, vector<1x16xf32>
    %2 = vector.shape_cast %1 : vector<1x16xf32> to vector<1x16xf32>
    %3 = vector.broadcast %2 : vector<1x16xf32> to vector<4x16xf32>
    %c0_i32 = arith.constant 0 : i32
    %4 = arith.index_cast %c0_i32 : i32 to index
    %c0_3 = arith.constant 0 : index
    %c0_4 = arith.constant 0 : index
    %5 = vector.load %arg1[%4, %c0_3, %c0_4] : memref<1x8x4xf32, #tpu.memory_space<vmem>>, vector<1x8x4xf32>
    %6 = vector.shape_cast %5 : vector<1x8x4xf32> to vector<8x4xf32>
    %cst = arith.constant dense<0.000000e+00> : vector<4x16xf32>
    %7 = tpu.matmul %6, %0, %cst {dimension_numbers = #tpu.dot_dimension_numbers<[0], [0], [1], [1], [0, 1, 1, 1], [], []>} : vector<8x4xf32>, vector<8x16xf32>, vector<4x16xf32> -> vector<4x16xf32>
    %8 = arith.addf %7, %3 : vector<4x16xf32>
    %cst_5 = arith.constant 0.000000e+00 : f32
    %9 = vector.broadcast %cst_5 : f32 to vector<4x16xf32>
    %10 = arith.maximumf %8, %9 : vector<4x16xf32>
    %11 = arith.index_cast %c0_i32 : i32 to index
    %c0_6 = arith.constant 0 : index
    %c0_7 = arith.constant 0 : index
    %12 = vector.load %arg4[%11, %c0_6, %c0_7] : memref<1x4x16xf32, #tpu.memory_space<vmem>>, vector<1x4x16xf32>
    %13 = vector.shape_cast %12 : vector<1x4x16xf32> to vector<4x16xf32>
    %14 = vector.shape_cast %10 : vector<4x16xf32> to vector<1x4x16xf32>
    tpu.vector_store %arg4[%11, %c0_6, %c0_7], %14 {strides = array<i32>} : memref<1x4x16xf32, #tpu.memory_space<vmem>>, vector<1x4x16xf32>,
    %c1_i32 = arith.constant 1 : i32
    return
  }
  func.func @transform_0(%arg0: i32) -> (i32, i32, i32) {
    %c0_i32 = arith.constant 0 : i32
    %c0_i32_0 = arith.constant 0 : i32
    %c0_i32_1 = arith.constant 0 : i32
    return %arg0, %c0_i32, %c0_i32_0 : i32, i32, i32
  }
  func.func @transform_1(%arg0: i32) -> (i32, i32) {
    %c0_i32 = arith.constant 0 : i32
    %c0_i32_0 = arith.constant 0 : i32
    %c0_i32_1 = arith.constant 0 : i32
    return %c0_i32, %c0_i32_0 : i32, i32
  }
  func.func @transform_2(%arg0: i32) -> (i32, i32) {
    %c0_i32 = arith.constant 0 : i32
    %c0_i32_0 = arith.constant 0 : i32
    %c0_i32_1 = arith.constant 0 : i32
    return %c0_i32, %c0_i32_0 : i32, i32
  }
  func.func @transform_3(%arg0: i32) -> (i32, i32, i32) {
    %c0_i32 = arith.constant 0 : i32
    %c0_i32_0 = arith.constant 0 : i32
    %c0_i32_1 = arith.constant 0 : i32
    return %arg0, %c0_i32, %c0_i32_0 : i32, i32, i32
  }
}

</mosaic_0001>

<bundles_post_ra>
// kernel: tpu_custom_call.1
= control target key start
LH: loop header
LB: loop body
LE: loop exit
PB: predicated region body
PF: predicated region fallthrough
CT: control target
= control target key end

     0   :  { %8 = vsyncpa [#allocation3], 0  ;;  %s610_s0 = inlined_call_operand.vmem [shape: f32[2,8,4], index: 0, kind: input, shape index: {}]   ;;  %s611_s1 = inlined_call_operand.vmem [shape: f32[8,16], index: 1, kind: input, shape index: {}]   ;;  %s612_s2 = inlined_call_operand.vmem [shape: f32[1,16], index: 2, kind: input, shape index: {}]   ;;  %s613_s3 = inlined_call_operand.hbm [shape: f32[2,4,16], index: 3, kind: output, shape index: {}]  }
   0x1   :  { %10 = vsyncpa [#allocation3 + $0x1], 0  ;;  %s504_s12 = smov 0   ;;  %s506_s13 = smov 0  }
   0x2   :  { %s508_s14 = smov 0   ;;  %s510_s15 = smov 0  }
   0x3 LB: > { %s525_s16 = sadd.s32 4294967295, %s479_s15   ;;  %s357_s17 = sadd.s32 4294967294, %s479_s15   ;;  %s479_s15 = sphi %s510_s15, %s619_s15   ;;  %s475_s14 = sphi %s508_s14, %s618_s14   ;;  %s471_s13 = sphi %s506_s13, %s617_s13   ;;  %s467_s12 = sphi %s504_s12, %s616_s12  }
   0x4   : > { %s529_s18 = sadd.s32 1, %s479_s15   ;;  %s91_s19 = sadd.s32 1, %s475_s14 }
   0x5   : > { %s88_s20 = ssub.s32 %s479_s15, %s529_s18  ;;  %p101_p0 = scmp.ne.s32.totalorder %s475_s14, %s471_s13 }
   0x6   : > { %p89_p1 = scmp.eq.s32.totalorder %s88_s20, 0  ;;  %p102_p2 = scmp.eq.s32.totalorder %s525_s16, 1 }
   0x7   : > { %p107_p3 = scmp.ne.s32.totalorder %s471_s13, %s467_s12  ;;  %p108_p4 = scmp.eq.s32.totalorder %s357_s17, 1 }
   0x8   : > { %s540_s21 = scalar_select %p89_p1, %s475_s14, %s91_s19  }
   0x9   : > { %p542_p5 = por %p102_p2, %p101_p0  ;;  %p546_p6 = por %p108_p4, %p107_p3 }
   0xa   : > { %p360_p7 = scmp.ge.s32.totalorder %s479_s15, 1  ;;  %p139_p8 = scmp.lt.s32.totalorder %s479_s15, 3 }
   0xc   : > { %p140_p9 = pnand %p360_p7, %p139_p8 }
   0xd   : > { %p162_p10 = scmp.lt.s32.totalorder (!%p140_p9), %s525_s16, 1  ;;  %v166_v0 = vld [vmem:[%s611_s1] sm:$0xff] (!%p140_p9)  ;;  %v481_v1 = vmov (!%p140_p9), 0.0   ;;  %vm482_vm0 = vmmov (!%p140_p9), 0   ;;  %vm207_vm1 = vcmask (!%p140_p9), 64512   ;;  %s159_s4 = sand.u32 (!%p140_p9), 1, %s471_s13  }
   0xe   : > { %143 = sbr.rel (%p140_p9) target bundleno = 385 (0x181), region = 32  ;;  %371 = vmatprep.subr.mxu0 (!%p140_p9), %v481_v1  ;;  %373 = vmatprep.mubr.msk.f32.mxu0 (!%p140_p9), %vm482_vm0, %v481_v1  ;;  %s361_s5 = sshll.u32 (!%p140_p9), %s159_s4, 2  ;;  %v363_v4 = vld [vmem:[%s612_s2] ss:$0 sm:$0xff] (!%p140_p9)  ;;  %vm282_vm2 = vcmask (!%p140_p9), 125952  }
   0xf   : > { %372 = vmatpush3.msra.mxu0 (!%p140_p9), %v166_v0  ;;  %s366_s8 = sshll.u32 (!%p140_p9), %s525_s16, 6  ;;  %s161_s9 = scalar_lea.vmem (!%p140_p9), [#allocation2], %s361_s5 }
  0x10   : > { %s298_s10 = sshll.u32 (!%p140_p9), %s161_s9, 4  ;;  %s568_s19 = scalar_lea.hbm (!%p140_p9), %s613_s3, %s366_s8  ;;  %s570_s10 = int_to_ptr.vmem [resolvable:$true] %s298_s10 }
  0x11   : > { %s285_s20 = scalar_lea.sflag (!%p140_p9), [#allocation3], %s159_s4  ;;  %s417_s24 = scalar_lea.vmem (!%p140_p9), %s570_s10, 64 }
  0x12   : > { %p418_p11 = scmp.ne.s32.totalorder (!%p140_p9), %s570_s10, %s417_s24 }
  0x14   : > { %p419_p12 = pnand (!%p140_p9), %p418_p11, %p542_p5 }
  0x15   : > { %s163_s26 = scalar_select %p162_p10, %s525_s16, 1 }
  0x16   : > { %p420_p13 = pneg %p419_p12  ;;  %s483_s16 = smov [#allocation2]  }
  0x17   : > { %s362_s27 = sshll.u32 %s163_s26, 3  ;;  %s421_s25 = sshll.u32 %s483_s16, 4  ;;  %s422_s25 = int_to_ptr.vmem [resolvable:$false] %s421_s25 }
  0x18   : > { %s165_s30 = scalar_lea.vmem %s610_s0, %s362_s27  ;;  %s423_s26 = scalar_lea.vmem %s422_s25, 128 }
  0x19   : > { %v174_v2 = vld [vmem:[%s165_s30] sm:$0xff]  ;;  %p424_p0 = scmp.lt.s32.totalorder %s570_s10, %s422_s25  ;;  %p425_p1 = scmp.lt.s32.totalorder %s423_s26, %s417_s24 }
  0x1a   : > { %175 = vxpose.xlu0.b32.start.end [1/1] (short) (narrow) %v174_v2, 8 }
  0x1b   : > { %p426_p2 = por %p425_p1, %p424_p0 }
  0x1d   : > { %p427_p3 = pnand %p426_p2, %p420_p13 }
  0x9a   : > { %v191_v3 = vpop.trf.xlu0 }
  0x9b   : > { %374 = vmatmul.mubr.msk.f32.vlgmr.msra.gmra.mrb[0].mxu0 %vm207_vm1, %v191_v3 }
 0x16e   : > { %v277_v5 = vpop.f32.mrb[0].mxu0 }
 0x16f   : > { %v278_v6 = vadd.f32 %v363_v4, %v277_v5  ;;  %v375_v7 = vpop.f32.mrb[1].mxu0 }
 0x171   : > { %v281_v8 = vmax.f32 %v278_v6, 0.0 }
 0x173   : > { %283 = vst.msk [vmem:[%s161_s9] sm:$0xf] %vm282_vm2, %v281_v8 }
 0x174   : > { %430 = shalt.err (!%p427_p3)
}
 0x175   : > { %s431_s27 = scalar_lea.hbm %s568_s19, 64  ;;  %s435_s30 = scalar_lea.hbm %s613_s3, 128 }
 0x176   : > { %p432_p4 = scmp.ne.s32.totalorder %s568_s19, %s431_s27  ;;  %p436_p9 = scmp.lt.u32.totalorder %s568_s19, %s613_s3 }
 0x177   : > { %p437_p10 = scmp.lt.u32.totalorder %s435_s30, %s431_s27  ;;  %p439_p12 = scmp.lt.u32.totalorder %s431_s27, %s568_s19 }
 0x178   : > { %p433_p7 = pnand %p432_p4, %p542_p5 }
 0x179   : > { %p438_p11 = por %p437_p10, %p436_p9 }
 0x17a   : > { %p434_p8 = pneg %p433_p7 }
 0x17b   : > { %p440_p13 = por %p439_p12, %p438_p11 }
 0x17d   : > { %p441_p0 = pnand %p440_p13, %p434_p8 }
 0x17f   : > { %444 = shalt.err (!%p441_p0)
}
 0x180   : > { %376 = dma.vmem_to_hbm [thread:$0]  (%p542_p5), %s570_s10, 64, %s568_s19, %s285_s20  }
 0x181 PF: > { %p382_p1 = scmp.ge.s32.totalorder %s479_s15, 2  ;;  %s310_s6 = sand.u32 1, %s467_s12  }
 0x182   : > { %s311_s7 = scalar_lea.sflag [#allocation3], %s310_s6 }
 0x183   : > { %p379_p2 = pnand %p382_p1, %p546_p6 }
 0x185   : > { %462 = dma.done.wait (!%p379_p2), %s311_s7, 64  }
 0x186   : > { %464 = vsyncadd (!%p379_p2), %s311_s7, 4294967232  ;;  %p13_p3 = scmp.ge.s32.totalorder %s529_s18, 4   ;;  %s616_s12 = smov %s471_s13 }
 0x187   : > { %s617_s13 = smov %s475_s14  ;;  %s618_s14 = smov %s540_s21 }
 0x188   : > { %s619_s15 = smov %s529_s18  ;;  %15 = sbr.rel (!%p13_p3) target bundleno = 3 (0x3), region = 67 }
 0x18f   :  { %316 = vsyncpa [#allocation3], 1 }
 0x190   :  { %318 = vsyncpa [#allocation3 + $0x1], 1 }

</bundles_post_ra>
